<compile_context>
chip_gen: v6e
topology: v6e:2x2x1
jax: 0.10.0
libtpu: 0.0.40
codegen_flags: <defaults>
</compile_context>

<pallas_src>
import functools

import jax
import jax.numpy as jnp
from jax import lax
from jax.experimental import pallas as pl
from jax.experimental.pallas import tpu as pltpu


_LANE = 128          # lane width of the packed weight slab / vecs array
_ROW_TILE = 16       # bf16 sublane packing -> pad every contraction dim to x16


def _pad_cols(x, total):
    """Zero-pad the last dim of a [B, k] value up to `total` columns."""
    pad = total - x.shape[1]
    if pad == 0:
        return x
    return jnp.concatenate([x, jnp.zeros((x.shape[0], pad), x.dtype)], axis=1)


def critic_kernel(state_ref, action_ref, slab_ref, vecs_ref, q_ref, *, dims):
    eps = 1e-5
    S, A = dims["S"], dims["A"]
    H1, H2 = dims["H1"], dims["H2"]
    R1, R2, R3 = dims["R1"], dims["R2"], dims["R3"]
    o1, o2, o3 = 0, dims["R1"], dims["R1"] + dims["R2"]

    s = state_ref[...]                        # [B, S]  f32
    a = action_ref[...]                       # [B, A]  f32
    b = s.shape[0]
    inv_b = 1.0 / b

    # Packed per-feature vectors: rows = [g1, be1, g2, be2, bout], lane-padded.
    vecs = vecs_ref[...]                      # [5, 128] f32
    g1, be1 = vecs[0:1, :H1], vecs[1:2, :H1]
    g2, be2 = vecs[2:3, :H2], vecs[3:4, :H2]
    bo = vecs[4:5, :A]

    # ---- layer 1: Linear(S -> H1) [bias cancelled by train-BN] + BN + ReLU ----
    w1 = slab_ref[o1:o1 + R1, :]              # [R1, 128] bf16 (zero rows >= S)
    s_pad = _pad_cols(s, R1).astype(w1.dtype)                         # [B, R1]
    h1 = jnp.dot(s_pad, w1, preferred_element_type=jnp.float32)[:, :H1]  # [B, H1]
    m1 = jnp.sum(h1, axis=0, keepdims=True) * inv_b
    var1 = jnp.maximum(jnp.sum(h1 * h1, axis=0, keepdims=True) * inv_b - m1 * m1, 0.0)
    scale1 = g1 * lax.rsqrt(var1 + eps)
    shift1 = be1 - m1 * scale1
    xs = jnp.maximum(h1 * scale1 + shift1, 0.0)                       # [B, H1] f32

    # ---- layer 2: Linear(H1 + A -> H2) + BN + ReLU (single fused matmul) ----
    w2 = slab_ref[o2:o2 + R2, :]              # [R2, 128] bf16 (zero rows >= H1+A)
    x_cat = _pad_cols(jnp.concatenate([xs, a], axis=1), R2).astype(w2.dtype)
    h2 = jnp.dot(x_cat, w2, preferred_element_type=jnp.float32)[:, :H2]   # [B, H2]
    m2 = jnp.sum(h2, axis=0, keepdims=True) * inv_b
    var2 = jnp.maximum(jnp.sum(h2 * h2, axis=0, keepdims=True) * inv_b - m2 * m2, 0.0)
    scale2 = g2 * lax.rsqrt(var2 + eps)
    shift2 = be2 - m2 * scale2
    x2 = jnp.maximum(h2 * scale2 + shift2, 0.0)                       # [B, H2] f32

    # ---- output: Linear(H2 -> A) ----
    wo = slab_ref[o3:o3 + R3, :]              # [R3, 128] bf16
    x2_pad = _pad_cols(x2, R3).astype(wo.dtype)
    q = jnp.dot(x2_pad, wo, preferred_element_type=jnp.float32)[:, :A] + bo
    q_ref[...] = q.astype(q_ref.dtype)


def make_critic_params(key, state_size, action_size, hidden_layers):
    """Deterministic parameter init mimicking the PyTorch module's shapes."""
    h1, h2 = hidden_layers
    ks = jax.random.split(key, 8)

    def unif(k, shape, lim):
        return jax.random.uniform(k, shape, jnp.float32, -lim, lim)

    # hidden_init uses weight.size()[0] (== out_features) for the limit.
    w1 = unif(ks[0], (h1, state_size), 1.0 / jnp.sqrt(h1))          # Linear1 weight [out, in]
    b1 = unif(ks[1], (h1,), 1.0 / jnp.sqrt(state_size))
    w2 = unif(ks[2], (h2, h1 + action_size), 1.0 / jnp.sqrt(h2))    # Linear2 weight
    b2 = unif(ks[3], (h2,), 1.0 / jnp.sqrt(h1 + action_size))
    wo = unif(ks[4], (action_size, h2), 0.003)                      # output weight
    bo = unif(ks[5], (action_size,), 1.0 / jnp.sqrt(h2))

    # BatchNorm1d affine params (PyTorch defaults: gamma=1, beta=0)
    g1, be1 = jnp.ones((h1,), jnp.float32), jnp.zeros((h1,), jnp.float32)
    g2, be2 = jnp.ones((h2,), jnp.float32), jnp.zeros((h2,), jnp.float32)

    return dict(w1=w1, b1=b1, g1=g1, be1=be1,
                w2=w2, b2=b2, g2=g2, be2=be2,
                wo=wo, bo=bo)


def prepare_critic_params(params, matmul_dtype=jnp.bfloat16):
    """One-time weight preprocessing (hoisted out of the per-call path).

    - Pre-transpose weights to [in, out].
    - Zero-pad each contraction dim to a multiple of 16 rows (bf16 sublane tile)
      and each output dim to 128 lanes, then stack all three weight blocks along
      the sublane axis into ONE bf16 slab -> a single input DMA for all weights.
    - b1/b2 are intentionally discarded: train-mode BN cancels them exactly.
      NOTE: these prepared params therefore only reproduce the train-mode forward;
      eval-mode (running-stats) inference would need b1/b2 and running stats.
    - Per-feature vectors (g1, be1, g2, be2, bout) packed into one [5, 128] f32 array.
    """
    h1, s = params["w1"].shape
    h2 = params["w2"].shape[0]
    a = params["wo"].shape[0]

    def rpad(n):
        return -(-n // _ROW_TILE) * _ROW_TILE

    r1, r2, r3 = rpad(s), rpad(h1 + a), rpad(h2)

    def block(w_t, rows):                      # w_t: [k, n] -> [rows, 128]
        k, n = w_t.shape
        out = jnp.zeros((rows, _LANE), matmul_dtype)
        return out.at[:k, :n].set(w_t.astype(matmul_dtype))

    slab = jnp.concatenate(
        [block(params["w1"].T, r1),            # rows [0,      r1)      : W1^T  [S,    H1]
         block(params["w2"].T, r2),            # rows [r1,     r1+r2)   : W2^T  [H1+A, H2]
         block(params["wo"].T, r3)],           # rows [r1+r2,  r1+r2+r3): Wout^T[H2,   A]
        axis=0)                                # [r1+r2+r3, 128] bf16

    def vrow(v):
        return jnp.pad(v.astype(jnp.float32), (0, _LANE - v.shape[0]))

    vecs = jnp.stack([vrow(params["g1"]), vrow(params["be1"]),
                      vrow(params["g2"]), vrow(params["be2"]),
                      vrow(params["bo"])], axis=0)                    # [5, 128] f32

    dims = dict(S=s, A=a, H1=h1, H2=h2, R1=r1, R2=r2, R3=r3)
    return dict(slab=slab, vecs=vecs, dims=dims)


def critic_forward(prep, state, action):
    """Run the fused Critic forward pass with pre-prepared parameters."""
    dims = prep["dims"]
    b = state.shape[0]
    a_dim = dims["A"]

    kernel = functools.partial(critic_kernel, dims=dims)

    flops = 2 * b * (dims["S"] * dims["H1"]
                     + (dims["H1"] + dims["A"]) * dims["H2"]
                     + dims["H2"] * dims["A"])
    bytes_accessed = int(state.size * state.dtype.itemsize
                         + action.size * action.dtype.itemsize
                         + prep["slab"].size * prep["slab"].dtype.itemsize
                         + prep["vecs"].size * prep["vecs"].dtype.itemsize
                         + b * a_dim * 4)
    cost = pl.CostEstimate(flops=flops,
                           transcendentals=dims["H1"] + dims["H2"],
                           bytes_accessed=bytes_accessed)

    # Grid-less call, whole arrays resident in VMEM (required: train-mode BN
    # needs whole-batch statistics; total footprint is ~50 KiB).
    vmem = pl.BlockSpec(memory_space=pltpu.MemorySpace.VMEM)
    return pl.pallas_call(
        kernel,
        out_shape=jax.ShapeDtypeStruct((b, a_dim), jnp.float32),
        in_specs=[vmem, vmem, vmem, vmem],
        out_specs=vmem,
        cost_estimate=cost,
    )(state, action, prep["slab"], prep["vecs"])


def critic_reference(params, state, action):
    """Pure-JAX f32 reference matching PyTorch semantics (train-mode BatchNorm)."""
    eps = 1e-5
    h1 = state @ params["w1"].T + params["b1"]
    m1, v1 = h1.mean(0), ((h1 - h1.mean(0)) ** 2).mean(0)
    xs = jnp.maximum(params["g1"] * (h1 - m1) / jnp.sqrt(v1 + eps) + params["be1"], 0.0)
    x = jnp.concatenate([xs, action], axis=1)
    h2 = x @ params["w2"].T + params["b2"]
    m2, v2 = h2.mean(0), ((h2 - h2.mean(0)) ** 2).mean(0)
    x2 = jnp.maximum(params["g2"] * (h2 - m2) / jnp.sqrt(v2 + eps) + params["be2"], 0.0)
    return x2 @ params["wo"].T + params["bo"]


if __name__ == "__main__":
    # Tennis-like sizes, kept small.
    B, STATE, ACTION = 8, 24, 2
    HIDDEN = (64, 32)

    key = jax.random.PRNGKey(0)
    k_param, k_state, k_action = jax.random.split(key, 3)

    params = make_critic_params(k_param, STATE, ACTION, HIDDEN)
    state = jax.random.normal(k_state, (B, STATE), jnp.float32)
    action = jax.random.uniform(k_action, (B, ACTION), jnp.float32, -1.0, 1.0)

    # One-time parameter prep (cached across calls in real use).
    prep = prepare_critic_params(params, matmul_dtype=jnp.bfloat16)

    q = critic_forward(prep, state, action)
    q = jax.block_until_ready(q)

    q_ref = critic_reference(params, state, action)
    assert q.shape == (B, ACTION)
    # bf16 MXU operands (f32 accumulate) + one-pass variance -> small delta vs f32 reference.
    assert jnp.allclose(q, q_ref, atol=5e-3, rtol=5e-3), (q, q_ref, jnp.max(jnp.abs(q - q_ref)))

    print("KERNEL_OK")
</pallas_src>

<mosaic_0001>
module attributes {stable_mosaic.version = 11 : i64} {
  func.func @critic_kernel(%arg0: memref<8x24xf32, #tpu.memory_space<vmem>>, %arg1: memref<8x2xf32, #tpu.memory_space<vmem>>, %arg2: memref<144x128xbf16, #tpu.memory_space<vmem>>, %arg3: memref<5x128xf32, #tpu.memory_space<vmem>>, %arg4: memref<8x2xf32, #tpu.memory_space<vmem>>) attributes {dimension_semantics = [], scalar_prefetch = 0 : i64, scratch_operands = 0 : i64, tpu.core_type = #tpu.core_type<tc>} {
    %c0 = arith.constant 0 : index
    %c0_0 = arith.constant 0 : index
    %0 = vector.load %arg0[%c0, %c0_0] : memref<8x24xf32, #tpu.memory_space<vmem>>, vector<8x24xf32>
    %c0_1 = arith.constant 0 : index
    %c0_2 = arith.constant 0 : index
    %1 = vector.load %arg1[%c0_1, %c0_2] : memref<8x2xf32, #tpu.memory_space<vmem>>, vector<8x2xf32>
    %c0_3 = arith.constant 0 : index
    %c0_4 = arith.constant 0 : index
    %2 = vector.load %arg3[%c0_3, %c0_4] : memref<5x128xf32, #tpu.memory_space<vmem>>, vector<5x128xf32>
    %3 = vector.extract_strided_slice %2 {offsets = [0, 0], sizes = [1, 64], strides = [1, 1]} : vector<5x128xf32> to vector<1x64xf32>
    %4 = vector.extract_strided_slice %2 {offsets = [1, 0], sizes = [1, 64], strides = [1, 1]} : vector<5x128xf32> to vector<1x64xf32>
    %5 = vector.extract_strided_slice %2 {offsets = [2, 0], sizes = [1, 32], strides = [1, 1]} : vector<5x128xf32> to vector<1x32xf32>
    %6 = vector.extract_strided_slice %2 {offsets = [3, 0], sizes = [1, 32], strides = [1, 1]} : vector<5x128xf32> to vector<1x32xf32>
    %7 = vector.extract_strided_slice %2 {offsets = [4, 0], sizes = [1, 2], strides = [1, 1]} : vector<5x128xf32> to vector<1x2xf32>
    %c0_5 = arith.constant 0 : index
    %c0_6 = arith.constant 0 : index
    %8 = vector.load %arg2[%c0_5, %c0_6] : memref<144x128xbf16, #tpu.memory_space<vmem>>, vector<32x128xbf16>
    %cst = arith.constant 0.000000e+00 : f32
    %9 = vector.broadcast %cst : f32 to vector<8x8xf32>
    %10 = tpu.concatenate %0, %9 in 1 : vector<8x24xf32>, vector<8x8xf32> -> vector<8x32xf32>
    %11 = arith.truncf %10 : vector<8x32xf32> to vector<8x32xbf16>
    %cst_7 = arith.constant dense<0.000000e+00> : vector<8x128xf32>
    %12 = tpu.matmul %11, %8, %cst_7 {dimension_numbers = #tpu.dot_dimension_numbers<[1], [0], [0], [1], [0, 0, 1, 1], [], []>} : vector<8x32xbf16>, vector<32x128xbf16>, vector<8x128xf32> -> vector<8x128xf32>
    %13 = vector.extract_strided_slice %12 {offsets = [0, 0], sizes = [8, 64], strides = [1, 1]} : vector<8x128xf32> to vector<8x64xf32>
    %cst_8 = arith.constant dense<0.000000e+00> : vector<64xf32>
    %14 = vector.multi_reduction <add>, %13, %cst_8 [0] : vector<8x64xf32> to vector<64xf32>
    %15 = vector.shape_cast %14 : vector<64xf32> to vector<1x64xf32>
    %cst_9 = arith.constant 1.250000e-01 : f32
    %16 = vector.broadcast %cst_9 : f32 to vector<1x64xf32>
    %17 = arith.mulf %15, %16 : vector<1x64xf32>
    %18 = arith.mulf %13, %13 : vector<8x64xf32>
    %cst_10 = arith.constant dense<0.000000e+00> : vector<64xf32>
    %19 = vector.multi_reduction <add>, %18, %cst_10 [0] : vector<8x64xf32> to vector<64xf32>
    %20 = vector.shape_cast %19 : vector<64xf32> to vector<1x64xf32>
    %cst_11 = arith.constant 1.250000e-01 : f32
    %21 = vector.broadcast %cst_11 : f32 to vector<1x64xf32>
    %22 = arith.mulf %20, %21 : vector<1x64xf32>
    %23 = arith.mulf %17, %17 : vector<1x64xf32>
    %24 = arith.subf %22, %23 : vector<1x64xf32>
    %cst_12 = arith.constant 0.000000e+00 : f32
    %25 = vector.broadcast %cst_12 : f32 to vector<1x64xf32>
    %26 = arith.maximumf %24, %25 : vector<1x64xf32>
    %cst_13 = arith.constant 9.99999974E-6 : f32
    %27 = vector.broadcast %cst_13 : f32 to vector<1x64xf32>
    %28 = arith.addf %26, %27 : vector<1x64xf32>
    %29 = math.rsqrt %28 : vector<1x64xf32>
    %30 = arith.mulf %3, %29 : vector<1x64xf32>
    %31 = arith.mulf %17, %30 : vector<1x64xf32>
    %32 = arith.subf %4, %31 : vector<1x64xf32>
    %33 = vector.broadcast %30 : vector<1x64xf32> to vector<8x64xf32>
    %34 = arith.mulf %13, %33 : vector<8x64xf32>
    %35 = vector.broadcast %32 : vector<1x64xf32> to vector<8x64xf32>
    %36 = arith.addf %34, %35 : vector<8x64xf32>
    %cst_14 = arith.constant 0.000000e+00 : f32
    %37 = vector.broadcast %cst_14 : f32 to vector<8x64xf32>
    %38 = arith.maximumf %36, %37 : vector<8x64xf32>
    %c32 = arith.constant 32 : index
    %c0_15 = arith.constant 0 : index
    %39 = vector.load %arg2[%c32, %c0_15] : memref<144x128xbf16, #tpu.memory_space<vmem>>, vector<80x128xbf16>
    %40 = tpu.concatenate %38, %1 in 1 : vector<8x64xf32>, vector<8x2xf32> -> vector<8x66xf32>
    %cst_16 = arith.constant 0.000000e+00 : f32
    %41 = vector.broadcast %cst_16 : f32 to vector<8x14xf32>
    %42 = tpu.concatenate %40, %41 in 1 : vector<8x66xf32>, vector<8x14xf32> -> vector<8x80xf32>
    %43 = arith.truncf %42 : vector<8x80xf32> to vector<8x80xbf16>
    %cst_17 = arith.constant dense<0.000000e+00> : vector<8x128xf32>
    %44 = tpu.matmul %43, %39, %cst_17 {dimension_numbers = #tpu.dot_dimension_numbers<[1], [0], [0], [1], [0, 0, 1, 1], [], []>} : vector<8x80xbf16>, vector<80x128xbf16>, vector<8x128xf32> -> vector<8x128xf32>
    %45 = vector.extract_strided_slice %44 {offsets = [0, 0], sizes = [8, 32], strides = [1, 1]} : vector<8x128xf32> to vector<8x32xf32>
    %cst_18 = arith.constant dense<0.000000e+00> : vector<32xf32>
    %46 = vector.multi_reduction <add>, %45, %cst_18 [0] : vector<8x32xf32> to vector<32xf32>
    %47 = vector.shape_cast %46 : vector<32xf32> to vector<1x32xf32>
    %cst_19 = arith.constant 1.250000e-01 : f32
    %48 = vector.broadcast %cst_19 : f32 to vector<1x32xf32>
    %49 = arith.mulf %47, %48 : vector<1x32xf32>
    %50 = arith.mulf %45, %45 : vector<8x32xf32>
    %cst_20 = arith.constant dense<0.000000e+00> : vector<32xf32>
    %51 = vector.multi_reduction <add>, %50, %cst_20 [0] : vector<8x32xf32> to vector<32xf32>
    %52 = vector.shape_cast %51 : vector<32xf32> to vector<1x32xf32>
    %cst_21 = arith.constant 1.250000e-01 : f32
    %53 = vector.broadcast %cst_21 : f32 to vector<1x32xf32>
    %54 = arith.mulf %52, %53 : vector<1x32xf32>
    %55 = arith.mulf %49, %49 : vector<1x32xf32>
    %56 = arith.subf %54, %55 : vector<1x32xf32>
    %cst_22 = arith.constant 0.000000e+00 : f32
    %57 = vector.broadcast %cst_22 : f32 to vector<1x32xf32>
    %58 = arith.maximumf %56, %57 : vector<1x32xf32>
    %cst_23 = arith.constant 9.99999974E-6 : f32
    %59 = vector.broadcast %cst_23 : f32 to vector<1x32xf32>
    %60 = arith.addf %58, %59 : vector<1x32xf32>
    %61 = math.rsqrt %60 : vector<1x32xf32>
    %62 = arith.mulf %5, %61 : vector<1x32xf32>
    %63 = arith.mulf %49, %62 : vector<1x32xf32>
    %64 = arith.subf %6, %63 : vector<1x32xf32>
    %65 = vector.broadcast %62 : vector<1x32xf32> to vector<8x32xf32>
    %66 = arith.mulf %45, %65 : vector<8x32xf32>
    %67 = vector.broadcast %64 : vector<1x32xf32> to vector<8x32xf32>
    %68 = arith.addf %66, %67 : vector<8x32xf32>
    %cst_24 = arith.constant 0.000000e+00 : f32
    %69 = vector.broadcast %cst_24 : f32 to vector<8x32xf32>
    %70 = arith.maximumf %68, %69 : vector<8x32xf32>
    %c112 = arith.constant 112 : index
    %c0_25 = arith.constant 0 : index
    %71 = vector.load %arg2[%c112, %c0_25] : memref<144x128xbf16, #tpu.memory_space<vmem>>, vector<32x128xbf16>
    %72 = arith.truncf %70 : vector<8x32xf32> to vector<8x32xbf16>
    %cst_26 = arith.constant dense<0.000000e+00> : vector<8x128xf32>
    %73 = tpu.matmul %72, %71, %cst_26 {dimension_numbers = #tpu.dot_dimension_numbers<[1], [0], [0], [1], [0, 0, 1, 1], [], []>} : vector<8x32xbf16>, vector<32x128xbf16>, vector<8x128xf32> -> vector<8x128xf32>
    %74 = vector.extract_strided_slice %73 {offsets = [0, 0], sizes = [8, 2], strides = [1, 1]} : vector<8x128xf32> to vector<8x2xf32>
    %75 = vector.broadcast %7 : vector<1x2xf32> to vector<8x2xf32>
    %76 = arith.addf %74, %75 : vector<8x2xf32>
    %c0_27 = arith.constant 0 : index
    %c0_28 = arith.constant 0 : index
    %77 = vector.load %arg4[%c0_27, %c0_28] : memref<8x2xf32, #tpu.memory_space<vmem>>, vector<8x2xf32>
    tpu.vector_store %arg4[%c0_27, %c0_28], %76 {strides = array<i32>} : memref<8x2xf32, #tpu.memory_space<vmem>>, vector<8x2xf32>,
    return
  }
}

</mosaic_0001>

<bundles_post_ra>
// kernel: tpu_custom_call.1
= control target key start
LH: loop header
LB: loop body
LE: loop exit
PB: predicated region body
PF: predicated region fallthrough
CT: control target
= control target key end

     0   :  { %9 = vsyncpa [#allocation3], 0  ;;  %s556_s0 = inlined_call_operand.vmem [shape: f32[8,24], index: 0, kind: input, shape index: {}]   ;;  %s557_s1 = inlined_call_operand.vmem [shape: f32[8,2], index: 1, kind: input, shape index: {}]   ;;  %s558_s2 = inlined_call_operand.hbm [shape: bf16[144,128], index: 2, kind: input, shape index: {}]   ;;  %s559_s3 = inlined_call_operand.hbm [shape: f32[5,128], index: 3, kind: input, shape index: {}]   ;;  %s560_s4 = inlined_call_operand.vmem [shape: f32[8,2], index: 4, kind: output, shape index: {}]  }
   0x1   :  { %10 = vsyncpa [#allocation5], 0  ;;  %s471_s15 = smov [#allocation2]  }
   0x2   :  { %s20_s16 = sshll.u32 %s471_s15, 4  ;;  %s21_s16 = int_to_ptr.vmem [resolvable:$true] %s20_s16 }
   0x3   :  { %s435_s17 = scalar_lea.vmem %s21_s16, 1152  ;;  %p440_p1 = scmp.lt.s32.totalorder %s21_s16, %s21_s16 }
   0x4   :  { %p436_p0 = scmp.ne.s32.totalorder %s21_s16, %s435_s17  ;;  %p441_p2 = scmp.lt.s32.totalorder %s435_s17, %s435_s17 }
   0x6   :  { %p442_p3 = por %p441_p2, %p440_p1 }
   0x8   :  { %p443_p4 = pnand %p442_p3, %p436_p0 }
   0xa   :  { %446 = shalt.err (!%p443_p4)
}
   0xb   :  { %s472_s18 = smov 64   ;;  %s473_s19 = smov 4  }
   0xc   :  { %26 = dma.hbm_to_vmem [thread:$0]  %s558_s2, 1152, %s21_s16, [#allocation3], %s472_s18, %s472_s18, %s473_s19  }
   0xd   :  { %s474_s22 = smov [#allocation4]  }
   0xe   :  { %s33_s23 = sshll.u32 %s474_s22, 4  ;;  %s34_s23 = int_to_ptr.vmem [resolvable:$true] %s33_s23 }
   0xf   :  { %s455_s24 = scalar_lea.vmem %s34_s23, 128  ;;  %p460_p6 = scmp.lt.s32.totalorder %s34_s23, %s34_s23 }
  0x10   :  { %p456_p5 = scmp.ne.s32.totalorder %s34_s23, %s455_s24  ;;  %p461_p7 = scmp.lt.s32.totalorder %s455_s24, %s455_s24 }
  0x12   :  { %p462_p8 = por %p461_p7, %p460_p6 }
  0x14   :  { %p463_p9 = pnand %p462_p8, %p456_p5 }
  0x16   :  { %466 = shalt.err (!%p463_p9)
}
  0x17   :  { %36 = dma.hbm_to_vmem [thread:$0]  %s559_s3, 128, %s34_s23, [#allocation5]  }
  0x18   :  { %467 = dma.done.wait [#allocation3], 1152  }
  0x19   :  { %468 = vsyncadd [#allocation3], 4294966144 }
  0x1a   :  { %469 = dma.done.wait [#allocation5], 128  }
  0x1b   :  { %470 = vsyncadd [#allocation5], 4294967168  ;;  %v475_v0 = vmov 0.0   ;;  %vm476_vm0 = vmmov 0   ;;  %v414_v1 = vld [vmem:[#allocation2 + $0x8] sm:$0xff]   ;;  %vm51_vm1 = vcmask 195584   ;;  %v139_v37 = vlaneseq }
  0x1c   :  { %378 = vmatprep.subr.bf16.mxu0 %v475_v0  ;;  %382 = vmatprep.mubr.msk.bf16.mxu0 %vm476_vm0, %v475_v0  ;;  %v415_v2 = vld [vmem:[#allocation2] sm:$0xff]   ;;  %vm66_vm2 = vcmask 261120   ;;  %v416_v7 = vld [vmem:[#allocation2 + $0x30] sm:$0xff]   ;;  %v417_v8 = vld [vmem:[#allocation2 + $0x28] sm:$0xff]   ;;  %vm110_vm3 = vcmask 523264   ;;  %vm165_vm4 = vcmask 539648  }
  0x1d   :  { %386 = vmatprep.subr.bf16.mxu1 %v475_v0  ;;  %396 = vmatprep.mubr.msk.bf16.mxu1 %vm476_vm0, %v475_v0  ;;  %v44_v3 = vld [vmem:[%s556_s0] sm:$0xff]  ;;  %v419_v10 = vld [vmem:[#allocation2 + $0x18] sm:$0xff]   ;;  %v420_v11 = vld [vmem:[#allocation2 + $0x10] sm:$0xff]   ;;  %v534_v38 = vshrl.u32 %v139_v37, 7  ;;  %vm198_vm5 = vcmask 654336   ;;  %vm346_vm6 = vcmask 15360  }
  0x1e   :  { %379 = vmatpush3.bf16.msra.mxu0 %v414_v1  ;;  %v45_v4 = vld [vmem:[%s557_s1] sm:$0xff]  ;;  %v52_v5 = vsel %vm51_vm1, %v44_v3, 0.0  ;;  %387 = vmatpush3.bf16.msra.mxu1 %v416_v7  ;;  %v536_v39 = vld [vmem:[#allocation4] sm:$0x1f]  ;;  %v422_v57 = vld [vmem:[#allocation2 + $0x38] sm:$0xff]  }
  0x1f   :  { %380 = vmatprep.subr.bf16.mxu0 %v475_v0  ;;  %161 = vrot.lane.b32.xlu0 %v45_v4, %s472_s18  ;;  %v53_v6 = vpack.c.bf16 %v52_v5, %v52_v5  ;;  %v418_v9 = vld [vmem:[#allocation2 + $0x20] sm:$0xff]   ;;  %v141_v42 = vsub.s32 0, %v534_v38  ;;  %v146_v46 = vsub.s32 1, %v534_v38 }
  0x20   :  { %388 = vmatprep.subr.bf16.mxu1 %v475_v0  ;;  %v421_v56 = vld [vmem:[#allocation2 + $0x40] sm:$0xff]  }
  0x22   :  { %381 = vmatpush3.bf16.msra.mxu0 %v415_v2  ;;  %389 = vmatpush3.bf16.msra.mxu1 %v417_v8 }
  0x23   :  { %400 = vmatprep.subr.bf16.mxu0 %v475_v0  ;;  %390 = vmatprep.subr.bf16.mxu1 %v475_v0 }
  0x25   :  { %383 = vmatmul.mubr.msk.bf16.vlgmr.msra.gmra.mxu0 %vm66_vm2, %v53_v6 }
  0x26   :  { %404 = vmatprep.mubr.msk.bf16.mxu0 %vm476_vm0, %v475_v0  ;;  %391 = vmatpush3.bf16.msra.mxu1 %v418_v9 }
  0x27   :  { %392 = vmatprep.subr.bf16.mxu1 %v475_v0  ;;  %401 = vmatpush3.bf16.msra.mxu0 %v421_v56 }
  0x28   :  { %402 = vmatprep.subr.bf16.mxu0 %v475_v0 }
  0x2a   :  { %393 = vmatpush3.bf16.msra.mxu1 %v419_v10 }
  0x2b   :  { %394 = vmatprep.subr.bf16.mxu1 %v475_v0  ;;  %403 = vmatpush3.bf16.msra.mxu0 %v422_v57 }
  0x2e   :  { %395 = vmatpush3.bf16.msra.mxu1 %v420_v11 }
  0x91   :  { %v162_v51 = vpop.permute.xlu0 %161 }
  0xe5   :  { %v104_v12 = vpop.f32.mrf.mxu0 }
  0xe6   :  { %v111_v13 = vsel %vm110_vm3, %v104_v12, 0.0  ;;  %v119_v14 = vmul.f32 %v104_v12, %v104_v12 }
  0xe7   :  { %v112_v15 = vrot.slane %v111_v13, 4  ;;  %v384_v16 = vpop.f32.mrf.mxu0 }
  0xe8   :  { %v120_v17 = vsel %vm110_vm3, %v119_v14, 0.0 }
  0xe9   :  { %v113_v18 = vadd.f32 %v112_v15, %v111_v13  ;;  %v121_v19 = vrot.slane %v120_v17, 4  ;;  %v107_v20 = vpop.f32.mrf.mxu0 }
  0xeb   :  { %v114_v21 = vrot.slane %v113_v18, 2  ;;  %v122_v22 = vadd.f32 %v121_v19, %v120_v17  ;;  %v385_v23 = vpop.f32.mrf.mxu0 }
  0xed   :  { %v115_v24 = vadd.f32 %v114_v21, %v113_v18  ;;  %v123_v25 = vrot.slane %v122_v22, 2  ;;  %v272_v21 = vsub.s32 2, %v534_v38 }
  0xef   :  { %v116_v26 = vrot.slane %v115_v24, 1  ;;  %v124_v27 = vadd.f32 %v123_v25, %v122_v22  ;;  %v277_v25 = vsub.s32 3, %v534_v38 }
  0xf1   :  { %v117_v28 = vadd.f32 %v116_v26, %v115_v24  ;;  %v125_v29 = vrot.slane %v124_v27, 1 }
  0xf3   :  { %v118_v30 = vmul.f32 0.125, %v117_v28  ;;  %v126_v31 = vadd.f32 %v125_v29, %v124_v27 }
  0xf5   :  { %v127_v32 = vmul.f32 0.125, %v126_v31  ;;  %v128_v33 = vmul.f32 %v118_v30, %v118_v30 }
  0xf7   :  { %v129_v34 = vsub.f32 %v127_v32, %v128_v33  ;;  %v343_v32 = vsub.s32 4, %v534_v38 }
  0xf9   :  { %v130_v35 = vmax.f32 %v129_v34, 0.0  ;;  %v344_v33 = vrot.slane %v536_v39, %v343_v32 }
  0xfb   :  { %v131_v36 = vadd.f32 1e-05, %v130_v35 }
  0xfd   :  { %423 = vrsqrt.f32 %v131_v36 }
 0x10a   :  { %v424_v40 = vpop.eup %423 }
 0x10b   :  { %v133_v41 = vmul.f32 %v424_v40, %v536_v39 }
 0x10d   :  { %v134_v43 = vmul.f32 %v133_v41, %v118_v30  ;;  %v142_v45 = vrot.slane %v133_v41, %v141_v42 }
 0x10f   :  { %v136_v44 = vrot.slane %v134_v43, 7  ;;  %v143_v48 = vmul.f32 %v142_v45, %v104_v12 }
 0x111   :  { %v138_v47 = vsub.f32 %v536_v39, %v136_v44 }
 0x113   :  { %v147_v49 = vrot.slane %v138_v47, %v146_v46 }
 0x115   :  { %v148_v50 = vadd.f32 %v147_v49, %v143_v48 }
 0x117   :  { %v149_v52 = vmax.f32 %v148_v50, 0.0 }
 0x119   :  { %v164_v53 = vsel %vm110_vm3, %v149_v52, %v162_v51 }
 0x11a   :  { %v166_v54 = vsel %vm165_vm4, %v164_v53, 0.0 }
 0x11b   :  { %v167_v55 = vpack.c.bf16 %v166_v54, %v166_v54 }
 0x11d   :  { %397 = vmatmul.mubr.msk.bf16.vlgmr.msra.gmra.mxu1 %vm198_vm5, %v167_v55 }
 0x1dd   :  { %v236_v58 = vpop.f32.mrf.mxu1 }
 0x1de   :  { %v242_v59 = vsel %vm66_vm2, %v236_v58, 0.0  ;;  %v250_v60 = vmul.f32 %v236_v58, %v236_v58 }
 0x1df   :  { %v243_v61 = vrot.slane %v242_v59, 4  ;;  %v398_v62 = vpop.f32.mrf.mxu1 }
 0x1e0   :  { %v251_v63 = vsel %vm66_vm2, %v250_v60, 0.0 }
 0x1e1   :  { %v244_v1 = vadd.f32 %v243_v61, %v242_v59  ;;  %v252_v2 = vrot.slane %v251_v63, 4  ;;  %v239_v3 = vpop.f32.mrf.mxu1 }
 0x1e3   :  { %v245_v4 = vrot.slane %v244_v1, 2  ;;  %v253_v5 = vadd.f32 %v252_v2, %v251_v63  ;;  %v399_v6 = vpop.f32.mrf.mxu1 }
 0x1e5   :  { %v246_v7 = vadd.f32 %v245_v4, %v244_v1  ;;  %v254_v8 = vrot.slane %v253_v5, 2 }
 0x1e7   :  { %v247_v9 = vrot.slane %v246_v7, 1  ;;  %v255_v0 = vadd.f32 %v254_v8, %v253_v5 }
 0x1e9   :  { %v248_v10 = vadd.f32 %v247_v9, %v246_v7  ;;  %v256_v11 = vrot.slane %v255_v0, 1 }
 0x1eb   :  { %v249_v12 = vmul.f32 0.125, %v248_v10  ;;  %v257_v13 = vadd.f32 %v256_v11, %v255_v0 }
 0x1ed   :  { %v258_v14 = vmul.f32 0.125, %v257_v13  ;;  %v259_v15 = vmul.f32 %v249_v12, %v249_v12 }
 0x1ef   :  { %v260_v16 = vsub.f32 %v258_v14, %v259_v15 }
 0x1f1   :  { %v261_v17 = vmax.f32 %v260_v16, 0.0 }
 0x1f3   :  { %v262_v18 = vadd.f32 1e-05, %v261_v17 }
 0x1f5   :  { %425 = vrsqrt.f32 %v262_v18 }
 0x202   :  { %v426_v19 = vpop.eup %425 }
 0x203   :  { %v264_v20 = vmul.f32 %v426_v19, %v536_v39 }
 0x205   :  { %v265_v22 = vmul.f32 %v264_v20, %v249_v12  ;;  %v273_v24 = vrot.slane %v264_v20, %v272_v21 }
 0x207   :  { %v267_v23 = vrot.slane %v265_v22, 7  ;;  %v274_v27 = vmul.f32 %v273_v24, %v236_v58 }
 0x209   :  { %v269_v26 = vsub.f32 %v536_v39, %v267_v23 }
 0x20b   :  { %v278_v28 = vrot.slane %v269_v26, %v277_v25 }
 0x20d   :  { %v279_v29 = vadd.f32 %v278_v28, %v274_v27 }
 0x20f   :  { %v280_v30 = vmax.f32 %v279_v29, 0.0 }
 0x211   :  { %v285_v31 = vpack.c.bf16 %v280_v30, %v280_v30 }
 0x213   :  { %405 = vmatmul.mubr.msk.bf16.vlgmr.msra.gmra.mxu0 %vm66_vm2, %v285_v31 }
 0x2d3   :  { %v335_v34 = vpop.f32.mrf.mxu0 }
 0x2d4   :  { %v345_v35 = vadd.f32 %v344_v33, %v335_v34 }
 0x2d5   :  { %v406_v36 = vpop.f32.mrf.mxu0 }
 0x2d6   :  { %347 = vst.msk [vmem:[%s560_s4] sm:$0xff] %vm346_vm6, %v345_v35 }
 0x2d7   :  { %v338_v37 = vpop.f32.mrf.mxu0 }
 0x2d9   :  { %v407_v40 = vpop.f32.mrf.mxu0 }
 0x2da   :  { %352 = vsyncpa [#allocation3], 1 }
 0x2db   :  { %353 = vsyncpa [#allocation5], 1 }

</bundles_post_ra>
